<compile_context>
chip_gen: v6e
topology: v6e:2x2x1
jax: 0.10.0
libtpu: 0.0.40
codegen_flags: <defaults>
</compile_context>

<pallas_src>
import functools

import jax
import jax.numpy as jnp
import numpy as np
from jax.experimental import pallas as pl
from jax.experimental.pallas import tpu as pltpu


def _round_up(v, m):
    return (v + m - 1) // m * m


def _dedouble_conv_kernel(x_ref, mask_ref, w1_ref, w2_ref, o_ref,
                          t1_ref, t2_ref, *, C, O, O_pad, H, W, S):
    """One block of S packed samples per grid step; samples*spatial on lanes."""
    L = S * H * W
    taps = [(kh - 1, kw - 1) for kh in range(3) for kw in range(3)]

    # mask_ref: (8 + 9, L): rows 0..7 = constant [1;0;...;0] bias block,
    #                       rows 8..16 = per-tap halo masks.
    mask = mask_ref[...]
    const_rows = mask[:8, :]                                   # (8, L)

    def stack_taps(a, dst_ref, rows):
        # Write the 9 masked/shifted taps of `a` (rows, L) into dst_ref at
        # sublane offsets t*rows.  Lane shifts ride the XLU (pltpu.roll); the
        # halo mask is applied exactly once per tap, fused into the store.
        for t in range(9):
            dh, dw = taps[t]
            d = dh * W + dw
            shifted = a if d == 0 else pltpu.roll(a, (-d) % L, axis=1)
            dst_ref[t * rows:(t + 1) * rows, :] = mask[8 + t:9 + t, :] * shifted
        dst_ref[9 * rows:, :] = const_rows     # ones row -> bias column of W

    x = x_ref[0]                                               # (C, L)

    # Stage 1: depthwise 3x3 + pointwise 1x1 + BN1 + bias as ONE MXU matmul.
    stack_taps(x, t1_ref, C)
    y1 = jnp.maximum(
        jnp.dot(w1_ref[...], t1_ref[...], preferred_element_type=jnp.float32),
        0.0)                                                   # (O_pad, L)

    # Stage 2: 3x3 conv + BN2 + bias as ONE MXU matmul.
    stack_taps(y1, t2_ref, O_pad)
    y2 = jnp.maximum(
        jnp.dot(w2_ref[...], t2_ref[...], preferred_element_type=jnp.float32),
        0.0)                                                   # (O_pad, L)

    o_ref[0] = y2[:O].astype(o_ref.dtype)


def _choose_samples_per_step(n, hw, c_pad, o_pad, target_lanes=2048,
                             vmem_budget_bytes=8 << 20):
    """Pick S | n so the lane dim S*HW is wide while staying within VMEM."""
    rows = 2 * c_pad + 2 * o_pad + (9 * c_pad + 8) + (9 * o_pad + 8) + 17
    per_sample = 4 * hw * rows
    s = max(1, min(n,
                   max(1, target_lanes // max(hw, 1)),
                   max(1, vmem_budget_bytes // per_sample)))
    while n % s:
        s -= 1
    return s


def dedouble_conv_forward(x, params, eps=1e-5):
    """x: (N, C, H, W) f32 -> (N, O, H, W) = DeDoubleConv(x) (eval-mode BN)."""
    N, C, H, W = x.shape
    O = params["pw_w"].shape[0]
    HW = H * W
    f32 = jnp.float32

    C_pad = _round_up(C, 8)
    O_pad = _round_up(O, 8)
    K1 = 9 * C_pad + 8            # stacked stage-1 taps + bias/pad block
    K2 = 9 * O_pad + 8            # stacked stage-2 taps + bias/pad block

    # ---- fold eval-mode BatchNorm into the convolutions ---------------------
    s1 = params["bn1_gamma"] / jnp.sqrt(params["bn1_var"] + eps)          # (O,)
    b1 = params["bn1_beta"] - params["bn1_mean"] * s1                     # (O,)
    wp_f = params["pw_w"][:, :, 0, 0] * s1[:, None]                       # (O, C)
    wd = params["dw_w"][:, 0, :, :].reshape(C, 9)                         # (C, 9)

    s2 = params["bn2_gamma"] / jnp.sqrt(params["bn2_var"] + eps)
    b2 = params["conv2_b"] * s2 + params["bn2_beta"] - params["bn2_mean"] * s2
    w2_f = params["conv2_w"] * s2[:, None, None, None]                    # (O, O, 3, 3)

    # ---- fused stage-1 weight: W1[o, t*C_pad + c] = pw[o,c]*dw[c,t]; bias col
    w1_core = wp_f[:, None, :] * wd.T[None, :, :]                         # (O, 9, C)
    w1_core = jnp.pad(w1_core, ((0, 0), (0, 0), (0, C_pad - C)))
    w1 = jnp.zeros((O_pad, K1), f32)
    w1 = w1.at[:O, :9 * C_pad].set(w1_core.reshape(O, 9 * C_pad).astype(f32))
    w1 = w1.at[:O, 9 * C_pad].set(b1.astype(f32))

    # ---- fused stage-2 weight: W2[o, t*O_pad + i] = conv2_w[o,i,kh,kw]; bias
    w2_core = jnp.transpose(w2_f, (0, 2, 3, 1)).reshape(O, 9, O)          # (O, t, i)
    w2_core = jnp.pad(w2_core, ((0, 0), (0, 0), (0, O_pad - O)))
    w2 = jnp.zeros((O_pad, K2), f32)
    w2 = w2.at[:O, :9 * O_pad].set(w2_core.reshape(O, 9 * O_pad).astype(f32))
    w2 = w2.at[:O, 9 * O_pad].set(b2.astype(f32))

    # ---- pack S samples onto the lane axis per grid step ---------------------
    S = _choose_samples_per_step(N, HW, C_pad, O_pad)
    NB = N // S
    L = S * HW

    x_l = (x.astype(f32).reshape(NB, S, C, HW)
           .transpose(0, 2, 1, 3).reshape(NB, C, L))
    if C_pad != C:
        x_l = jnp.pad(x_l, ((0, 0), (0, C_pad - C), (0, 0)))

    # Constant [1;0;...;0] bias block + 9 halo masks (periodic in HW, tiled S x).
    hh, ww = np.meshgrid(np.arange(H), np.arange(W), indexing="ij")
    rows = []
    for kh in range(3):
        for kw in range(3):
            dh, dw = kh - 1, kw - 1
            valid = ((hh + dh >= 0) & (hh + dh < H) &
                     (ww + dw >= 0) & (ww + dw < W))
            rows.append(np.tile(valid.reshape(-1), S))
    const = np.zeros((8, L), np.float32)
    const[0, :] = 1.0
    mask_const = jnp.asarray(
        np.concatenate([const, np.stack(rows).astype(np.float32)], axis=0))  # (17, L)

    kernel = functools.partial(_dedouble_conv_kernel,
                               C=C_pad, O=O, O_pad=O_pad, H=H, W=W, S=S)

    out = pl.pallas_call(
        kernel,
        out_shape=jax.ShapeDtypeStruct((NB, O, L), x.dtype),
        grid=(NB,),
        in_specs=[
            pl.BlockSpec((1, C_pad, L), lambda n: (n, 0, 0)),   # packed input block
            pl.BlockSpec((17, L), lambda n: (0, 0)),            # bias rows + halo masks
            pl.BlockSpec((O_pad, K1), lambda n: (0, 0)),        # fused dw*pw*BN1 (+bias)
            pl.BlockSpec((O_pad, K2), lambda n: (0, 0)),        # fused conv2*BN2 (+bias)
        ],
        out_specs=pl.BlockSpec((1, O, L), lambda n: (n, 0, 0)),
        scratch_shapes=[
            pltpu.VMEM((K1, L), f32),   # stacked stage-1 taps
            pltpu.VMEM((K2, L), f32),   # stacked stage-2 taps
        ],
        compiler_params=pltpu.CompilerParams(
            dimension_semantics=("parallel",)),                 # v7x: shard over TCs
    )(x_l, mask_const, w1, w2)

    return out.reshape(NB, O, S, HW).transpose(0, 2, 1, 3).reshape(N, O, H, W)


# ------------------------------- pure-JAX reference --------------------------
def _bn_eval(y, gamma, beta, mean, var, eps):
    s = gamma / jnp.sqrt(var + eps)
    return y * s[None, :, None, None] + (beta - mean * s)[None, :, None, None]


def dedouble_conv_reference(x, params, eps=1e-5):
    C = x.shape[1]
    dn = ("NCHW", "OIHW", "NCHW")
    y = jax.lax.conv_general_dilated(x, params["dw_w"], (1, 1), ((1, 1), (1, 1)),
                                     dimension_numbers=dn, feature_group_count=C)
    y = jax.lax.conv_general_dilated(y, params["pw_w"], (1, 1), ((0, 0), (0, 0)),
                                     dimension_numbers=dn)
    y = jnp.maximum(_bn_eval(y, params["bn1_gamma"], params["bn1_beta"],
                             params["bn1_mean"], params["bn1_var"], eps), 0.0)
    y = jax.lax.conv_general_dilated(y, params["conv2_w"], (1, 1), ((1, 1), (1, 1)),
                                     dimension_numbers=dn)
    y = y + params["conv2_b"][None, :, None, None]
    y = jnp.maximum(_bn_eval(y, params["bn2_gamma"], params["bn2_beta"],
                             params["bn2_mean"], params["bn2_var"], eps), 0.0)
    return y


if __name__ == "__main__":
    key = jax.random.PRNGKey(0)
    ks = jax.random.split(key, 13)

    N, C_in, C_out, H, W = 2, 4, 8, 16, 16

    x = jax.random.normal(ks[0], (N, C_in, H, W), dtype=jnp.float32)
    params = {
        "dw_w": 0.3 * jax.random.normal(ks[1], (C_in, 1, 3, 3), jnp.float32),
        "pw_w": 0.3 * jax.random.normal(ks[2], (C_out, C_in, 1, 1), jnp.float32),
        "bn1_gamma": 1.0 + 0.1 * jax.random.normal(ks[3], (C_out,), jnp.float32),
        "bn1_beta": 0.1 * jax.random.normal(ks[4], (C_out,), jnp.float32),
        "bn1_mean": 0.1 * jax.random.normal(ks[5], (C_out,), jnp.float32),
        "bn1_var": jax.random.uniform(ks[6], (C_out,), jnp.float32, 0.5, 1.5),
        "conv2_w": 0.3 * jax.random.normal(ks[7], (C_out, C_out, 3, 3), jnp.float32),
        "conv2_b": 0.1 * jax.random.normal(ks[8], (C_out,), jnp.float32),
        "bn2_gamma": 1.0 + 0.1 * jax.random.normal(ks[9], (C_out,), jnp.float32),
        "bn2_beta": 0.1 * jax.random.normal(ks[10], (C_out,), jnp.float32),
        "bn2_mean": 0.1 * jax.random.normal(ks[11], (C_out,), jnp.float32),
        "bn2_var": jax.random.uniform(ks[12], (C_out,), jnp.float32, 0.5, 1.5),
    }

    out = jax.jit(dedouble_conv_forward)(x, params)
    out = jax.block_until_ready(out)

    ref = dedouble_conv_reference(x, params)
    assert out.shape == (N, C_out, H, W)
    np.testing.assert_allclose(np.asarray(out), np.asarray(ref),
                               rtol=1e-3, atol=1e-4)

    print("KERNEL_OK")
</pallas_src>

<mosaic_0001>
module attributes {stable_mosaic.version = 11 : i64} {
  func.func @_dedouble_conv_kernel(%arg0: i32, %arg1: memref<1x8x512xf32, #tpu.memory_space<vmem>>, %arg2: memref<17x512xf32, #tpu.memory_space<vmem>>, %arg3: memref<8x80xf32, #tpu.memory_space<vmem>>, %arg4: memref<8x80xf32, #tpu.memory_space<vmem>>, %arg5: memref<1x8x512xf32, #tpu.memory_space<vmem>>, %arg6: memref<80x512xf32, #tpu.memory_space<vmem>>, %arg7: memref<80x512xf32, #tpu.memory_space<vmem>>) attributes {dimension_semantics = [#tpu.dimension_semantics<parallel>], iteration_bounds = array<i64: 1>, scalar_prefetch = 0 : i64, scratch_operands = 2 : i64, tpu.core_type = #tpu.core_type<tc>, window_params = [{transform_indices = @transform_0, window_bounds = array<i64: 1, 8, 512>}, {pipeline_mode = #tpu.pipeline_mode<synchronous>, transform_indices = @transform_1, window_bounds = array<i64: 17, 512>}, {pipeline_mode = #tpu.pipeline_mode<synchronous>, transform_indices = @transform_2, window_bounds = array<i64: 8, 80>}, {pipeline_mode = #tpu.pipeline_mode<synchronous>, transform_indices = @transform_3, window_bounds = array<i64: 8, 80>}, {transform_indices = @transform_4, window_bounds = array<i64: 1, 8, 512>}]} {
    %c0 = arith.constant 0 : index
    %c0_0 = arith.constant 0 : index
    %0 = vector.load %arg2[%c0, %c0_0] : memref<17x512xf32, #tpu.memory_space<vmem>>, vector<17x512xf32>
    %1 = vector.extract_strided_slice %0 {offsets = [0, 0], sizes = [8, 512], strides = [1, 1]} : vector<17x512xf32> to vector<8x512xf32>
    %c0_1 = arith.constant 0 : index
    %c0_2 = arith.constant 0 : index
    %c0_3 = arith.constant 0 : index
    %2 = vector.load %arg1[%c0_1, %c0_2, %c0_3] : memref<1x8x512xf32, #tpu.memory_space<vmem>>, vector<1x8x512xf32>
    %3 = vector.shape_cast %2 : vector<1x8x512xf32> to vector<8x512xf32>
    %c17_i32 = arith.constant 17 : i32
    %4 = tpu.dynamic_rotate %3 by %c17_i32 dim 1 : vector<8x512xf32>, i32 -> vector<8x512xf32>
    %5 = vector.extract_strided_slice %0 {offsets = [8, 0], sizes = [1, 512], strides = [1, 1]} : vector<17x512xf32> to vector<1x512xf32>
    %6 = vector.broadcast %5 : vector<1x512xf32> to vector<8x512xf32>
    %7 = arith.mulf %6, %4 : vector<8x512xf32>
    %c0_4 = arith.constant 0 : index
    %c0_5 = arith.constant 0 : index
    %8 = vector.load %arg6[%c0_4, %c0_5] : memref<80x512xf32, #tpu.memory_space<vmem>>, vector<8x512xf32>
    tpu.vector_store %arg6[%c0_4, %c0_5], %7 {strides = array<i32>} : memref<80x512xf32, #tpu.memory_space<vmem>>, vector<8x512xf32>,
    %c16_i32 = arith.constant 16 : i32
    %9 = tpu.dynamic_rotate %3 by %c16_i32 dim 1 : vector<8x512xf32>, i32 -> vector<8x512xf32>
    %10 = vector.extract_strided_slice %0 {offsets = [9, 0], sizes = [1, 512], strides = [1, 1]} : vector<17x512xf32> to vector<1x512xf32>
    %11 = vector.broadcast %10 : vector<1x512xf32> to vector<8x512xf32>
    %12 = arith.mulf %11, %9 : vector<8x512xf32>
    %c8 = arith.constant 8 : index
    %c0_6 = arith.constant 0 : index
    %13 = vector.load %arg6[%c8, %c0_6] : memref<80x512xf32, #tpu.memory_space<vmem>>, vector<8x512xf32>
    tpu.vector_store %arg6[%c8, %c0_6], %12 {strides = array<i32>} : memref<80x512xf32, #tpu.memory_space<vmem>>, vector<8x512xf32>,
    %c15_i32 = arith.constant 15 : i32
    %14 = tpu.dynamic_rotate %3 by %c15_i32 dim 1 : vector<8x512xf32>, i32 -> vector<8x512xf32>
    %15 = vector.extract_strided_slice %0 {offsets = [10, 0], sizes = [1, 512], strides = [1, 1]} : vector<17x512xf32> to vector<1x512xf32>
    %16 = vector.broadcast %15 : vector<1x512xf32> to vector<8x512xf32>
    %17 = arith.mulf %16, %14 : vector<8x512xf32>
    %c16 = arith.constant 16 : index
    %c0_7 = arith.constant 0 : index
    %18 = vector.load %arg6[%c16, %c0_7] : memref<80x512xf32, #tpu.memory_space<vmem>>, vector<8x512xf32>
    tpu.vector_store %arg6[%c16, %c0_7], %17 {strides = array<i32>} : memref<80x512xf32, #tpu.memory_space<vmem>>, vector<8x512xf32>,
    %c1_i32 = arith.constant 1 : i32
    %19 = tpu.dynamic_rotate %3 by %c1_i32 dim 1 : vector<8x512xf32>, i32 -> vector<8x512xf32>
    %20 = vector.extract_strided_slice %0 {offsets = [11, 0], sizes = [1, 512], strides = [1, 1]} : vector<17x512xf32> to vector<1x512xf32>
    %21 = vector.broadcast %20 : vector<1x512xf32> to vector<8x512xf32>
    %22 = arith.mulf %21, %19 : vector<8x512xf32>
    %c24 = arith.constant 24 : index
    %c0_8 = arith.constant 0 : index
    %23 = vector.load %arg6[%c24, %c0_8] : memref<80x512xf32, #tpu.memory_space<vmem>>, vector<8x512xf32>
    tpu.vector_store %arg6[%c24, %c0_8], %22 {strides = array<i32>} : memref<80x512xf32, #tpu.memory_space<vmem>>, vector<8x512xf32>,
    %24 = vector.extract_strided_slice %0 {offsets = [12, 0], sizes = [1, 512], strides = [1, 1]} : vector<17x512xf32> to vector<1x512xf32>
    %25 = vector.broadcast %24 : vector<1x512xf32> to vector<8x512xf32>
    %26 = arith.mulf %25, %3 : vector<8x512xf32>
    %c32 = arith.constant 32 : index
    %c0_9 = arith.constant 0 : index
    %27 = vector.load %arg6[%c32, %c0_9] : memref<80x512xf32, #tpu.memory_space<vmem>>, vector<8x512xf32>
    tpu.vector_store %arg6[%c32, %c0_9], %26 {strides = array<i32>} : memref<80x512xf32, #tpu.memory_space<vmem>>, vector<8x512xf32>,
    %c511_i32 = arith.constant 511 : i32
    %28 = tpu.dynamic_rotate %3 by %c511_i32 dim 1 : vector<8x512xf32>, i32 -> vector<8x512xf32>
    %29 = vector.extract_strided_slice %0 {offsets = [13, 0], sizes = [1, 512], strides = [1, 1]} : vector<17x512xf32> to vector<1x512xf32>
    %30 = vector.broadcast %29 : vector<1x512xf32> to vector<8x512xf32>
    %31 = arith.mulf %30, %28 : vector<8x512xf32>
    %c40 = arith.constant 40 : index
    %c0_10 = arith.constant 0 : index
    %32 = vector.load %arg6[%c40, %c0_10] : memref<80x512xf32, #tpu.memory_space<vmem>>, vector<8x512xf32>
    tpu.vector_store %arg6[%c40, %c0_10], %31 {strides = array<i32>} : memref<80x512xf32, #tpu.memory_space<vmem>>, vector<8x512xf32>,
    %c497_i32 = arith.constant 497 : i32
    %33 = tpu.dynamic_rotate %3 by %c497_i32 dim 1 : vector<8x512xf32>, i32 -> vector<8x512xf32>
    %34 = vector.extract_strided_slice %0 {offsets = [14, 0], sizes = [1, 512], strides = [1, 1]} : vector<17x512xf32> to vector<1x512xf32>
    %35 = vector.broadcast %34 : vector<1x512xf32> to vector<8x512xf32>
    %36 = arith.mulf %35, %33 : vector<8x512xf32>
    %c48 = arith.constant 48 : index
    %c0_11 = arith.constant 0 : index
    %37 = vector.load %arg6[%c48, %c0_11] : memref<80x512xf32, #tpu.memory_space<vmem>>, vector<8x512xf32>
    tpu.vector_store %arg6[%c48, %c0_11], %36 {strides = array<i32>} : memref<80x512xf32, #tpu.memory_space<vmem>>, vector<8x512xf32>,
    %c496_i32 = arith.constant 496 : i32
    %38 = tpu.dynamic_rotate %3 by %c496_i32 dim 1 : vector<8x512xf32>, i32 -> vector<8x512xf32>
    %39 = vector.extract_strided_slice %0 {offsets = [15, 0], sizes = [1, 512], strides = [1, 1]} : vector<17x512xf32> to vector<1x512xf32>
    %40 = vector.broadcast %39 : vector<1x512xf32> to vector<8x512xf32>
    %41 = arith.mulf %40, %38 : vector<8x512xf32>
    %c56 = arith.constant 56 : index
    %c0_12 = arith.constant 0 : index
    %42 = vector.load %arg6[%c56, %c0_12] : memref<80x512xf32, #tpu.memory_space<vmem>>, vector<8x512xf32>
    tpu.vector_store %arg6[%c56, %c0_12], %41 {strides = array<i32>} : memref<80x512xf32, #tpu.memory_space<vmem>>, vector<8x512xf32>,
    %c495_i32 = arith.constant 495 : i32
    %43 = tpu.dynamic_rotate %3 by %c495_i32 dim 1 : vector<8x512xf32>, i32 -> vector<8x512xf32>
    %44 = vector.extract_strided_slice %0 {offsets = [16, 0], sizes = [1, 512], strides = [1, 1]} : vector<17x512xf32> to vector<1x512xf32>
    %45 = vector.broadcast %44 : vector<1x512xf32> to vector<8x512xf32>
    %46 = arith.mulf %45, %43 : vector<8x512xf32>
    %c64 = arith.constant 64 : index
    %c0_13 = arith.constant 0 : index
    %47 = vector.load %arg6[%c64, %c0_13] : memref<80x512xf32, #tpu.memory_space<vmem>>, vector<8x512xf32>
    tpu.vector_store %arg6[%c64, %c0_13], %46 {strides = array<i32>} : memref<80x512xf32, #tpu.memory_space<vmem>>, vector<8x512xf32>,
    %c72 = arith.constant 72 : index
    %c0_14 = arith.constant 0 : index
    %48 = vector.load %arg6[%c72, %c0_14] : memref<80x512xf32, #tpu.memory_space<vmem>>, vector<8x512xf32>
    tpu.vector_store %arg6[%c72, %c0_14], %1 {strides = array<i32>} : memref<80x512xf32, #tpu.memory_space<vmem>>, vector<8x512xf32>,
    %c0_15 = arith.constant 0 : index
    %c0_16 = arith.constant 0 : index
    %49 = vector.load %arg3[%c0_15, %c0_16] : memref<8x80xf32, #tpu.memory_space<vmem>>, vector<8x80xf32>
    %c0_17 = arith.constant 0 : index
    %c0_18 = arith.constant 0 : index
    %50 = vector.load %arg6[%c0_17, %c0_18] : memref<80x512xf32, #tpu.memory_space<vmem>>, vector<80x512xf32>
    %cst = arith.constant dense<0.000000e+00> : vector<8x512xf32>
    %51 = tpu.matmul %49, %50, %cst {dimension_numbers = #tpu.dot_dimension_numbers<[1], [0], [0], [1], [0, 0, 1, 1], [], []>} : vector<8x80xf32>, vector<80x512xf32>, vector<8x512xf32> -> vector<8x512xf32>
    %cst_19 = arith.constant 0.000000e+00 : f32
    %52 = vector.broadcast %cst_19 : f32 to vector<8x512xf32>
    %53 = arith.maximumf %51, %52 : vector<8x512xf32>
    %c17_i32_20 = arith.constant 17 : i32
    %54 = tpu.dynamic_rotate %53 by %c17_i32_20 dim 1 : vector<8x512xf32>, i32 -> vector<8x512xf32>
    %55 = vector.extract_strided_slice %0 {offsets = [8, 0], sizes = [1, 512], strides = [1, 1]} : vector<17x512xf32> to vector<1x512xf32>
    %56 = vector.broadcast %55 : vector<1x512xf32> to vector<8x512xf32>
    %57 = arith.mulf %56, %54 : vector<8x512xf32>
    %c0_21 = arith.constant 0 : index
    %c0_22 = arith.constant 0 : index
    %58 = vector.load %arg7[%c0_21, %c0_22] : memref<80x512xf32, #tpu.memory_space<vmem>>, vector<8x512xf32>
    tpu.vector_store %arg7[%c0_21, %c0_22], %57 {strides = array<i32>} : memref<80x512xf32, #tpu.memory_space<vmem>>, vector<8x512xf32>,
    %c16_i32_23 = arith.constant 16 : i32
    %59 = tpu.dynamic_rotate %53 by %c16_i32_23 dim 1 : vector<8x512xf32>, i32 -> vector<8x512xf32>
    %60 = vector.extract_strided_slice %0 {offsets = [9, 0], sizes = [1, 512], strides = [1, 1]} : vector<17x512xf32> to vector<1x512xf32>
    %61 = vector.broadcast %60 : vector<1x512xf32> to vector<8x512xf32>
    %62 = arith.mulf %61, %59 : vector<8x512xf32>
    %c8_24 = arith.constant 8 : index
    %c0_25 = arith.constant 0 : index
    %63 = vector.load %arg7[%c8_24, %c0_25] : memref<80x512xf32, #tpu.memory_space<vmem>>, vector<8x512xf32>
    tpu.vector_store %arg7[%c8_24, %c0_25], %62 {strides = array<i32>} : memref<80x512xf32, #tpu.memory_space<vmem>>, vector<8x512xf32>,
    %c15_i32_26 = arith.constant 15 : i32
    %64 = tpu.dynamic_rotate %53 by %c15_i32_26 dim 1 : vector<8x512xf32>, i32 -> vector<8x512xf32>
    %65 = vector.extract_strided_slice %0 {offsets = [10, 0], sizes = [1, 512], strides = [1, 1]} : vector<17x512xf32> to vector<1x512xf32>
    %66 = vector.broadcast %65 : vector<1x512xf32> to vector<8x512xf32>
    %67 = arith.mulf %66, %64 : vector<8x512xf32>
    %c16_27 = arith.constant 16 : index
    %c0_28 = arith.constant 0 : index
    %68 = vector.load %arg7[%c16_27, %c0_28] : memref<80x512xf32, #tpu.memory_space<vmem>>, vector<8x512xf32>
    tpu.vector_store %arg7[%c16_27, %c0_28], %67 {strides = array<i32>} : memref<80x512xf32, #tpu.memory_space<vmem>>, vector<8x512xf32>,
    %c1_i32_29 = arith.constant 1 : i32
    %69 = tpu.dynamic_rotate %53 by %c1_i32_29 dim 1 : vector<8x512xf32>, i32 -> vector<8x512xf32>
    %70 = vector.extract_strided_slice %0 {offsets = [11, 0], sizes = [1, 512], strides = [1, 1]} : vector<17x512xf32> to vector<1x512xf32>
    %71 = vector.broadcast %70 : vector<1x512xf32> to vector<8x512xf32>
    %72 = arith.mulf %71, %69 : vector<8x512xf32>
    %c24_30 = arith.constant 24 : index
    %c0_31 = arith.constant 0 : index
    %73 = vector.load %arg7[%c24_30, %c0_31] : memref<80x512xf32, #tpu.memory_space<vmem>>, vector<8x512xf32>
    tpu.vector_store %arg7[%c24_30, %c0_31], %72 {strides = array<i32>} : memref<80x512xf32, #tpu.memory_space<vmem>>, vector<8x512xf32>,
    %74 = vector.extract_strided_slice %0 {offsets = [12, 0], sizes = [1, 512], strides = [1, 1]} : vector<17x512xf32> to vector<1x512xf32>
    %75 = vector.broadcast %74 : vector<1x512xf32> to vector<8x512xf32>
    %76 = arith.mulf %75, %53 : vector<8x512xf32>
    %c32_32 = arith.constant 32 : index
    %c0_33 = arith.constant 0 : index
    %77 = vector.load %arg7[%c32_32, %c0_33] : memref<80x512xf32, #tpu.memory_space<vmem>>, vector<8x512xf32>
    tpu.vector_store %arg7[%c32_32, %c0_33], %76 {strides = array<i32>} : memref<80x512xf32, #tpu.memory_space<vmem>>, vector<8x512xf32>,
    %c511_i32_34 = arith.constant 511 : i32
    %78 = tpu.dynamic_rotate %53 by %c511_i32_34 dim 1 : vector<8x512xf32>, i32 -> vector<8x512xf32>
    %79 = vector.extract_strided_slice %0 {offsets = [13, 0], sizes = [1, 512], strides = [1, 1]} : vector<17x512xf32> to vector<1x512xf32>
    %80 = vector.broadcast %79 : vector<1x512xf32> to vector<8x512xf32>
    %81 = arith.mulf %80, %78 : vector<8x512xf32>
    %c40_35 = arith.constant 40 : index
    %c0_36 = arith.constant 0 : index
    %82 = vector.load %arg7[%c40_35, %c0_36] : memref<80x512xf32, #tpu.memory_space<vmem>>, vector<8x512xf32>
    tpu.vector_store %arg7[%c40_35, %c0_36], %81 {strides = array<i32>} : memref<80x512xf32, #tpu.memory_space<vmem>>, vector<8x512xf32>,
    %c497_i32_37 = arith.constant 497 : i32
    %83 = tpu.dynamic_rotate %53 by %c497_i32_37 dim 1 : vector<8x512xf32>, i32 -> vector<8x512xf32>
    %84 = vector.extract_strided_slice %0 {offsets = [14, 0], sizes = [1, 512], strides = [1, 1]} : vector<17x512xf32> to vector<1x512xf32>
    %85 = vector.broadcast %84 : vector<1x512xf32> to vector<8x512xf32>
    %86 = arith.mulf %85, %83 : vector<8x512xf32>
    %c48_38 = arith.constant 48 : index
    %c0_39 = arith.constant 0 : index
    %87 = vector.load %arg7[%c48_38, %c0_39] : memref<80x512xf32, #tpu.memory_space<vmem>>, vector<8x512xf32>
    tpu.vector_store %arg7[%c48_38, %c0_39], %86 {strides = array<i32>} : memref<80x512xf32, #tpu.memory_space<vmem>>, vector<8x512xf32>,
    %c496_i32_40 = arith.constant 496 : i32
    %88 = tpu.dynamic_rotate %53 by %c496_i32_40 dim 1 : vector<8x512xf32>, i32 -> vector<8x512xf32>
    %89 = vector.extract_strided_slice %0 {offsets = [15, 0], sizes = [1, 512], strides = [1, 1]} : vector<17x512xf32> to vector<1x512xf32>
    %90 = vector.broadcast %89 : vector<1x512xf32> to vector<8x512xf32>
    %91 = arith.mulf %90, %88 : vector<8x512xf32>
    %c56_41 = arith.constant 56 : index
    %c0_42 = arith.constant 0 : index
    %92 = vector.load %arg7[%c56_41, %c0_42] : memref<80x512xf32, #tpu.memory_space<vmem>>, vector<8x512xf32>
    tpu.vector_store %arg7[%c56_41, %c0_42], %91 {strides = array<i32>} : memref<80x512xf32, #tpu.memory_space<vmem>>, vector<8x512xf32>,
    %c495_i32_43 = arith.constant 495 : i32
    %93 = tpu.dynamic_rotate %53 by %c495_i32_43 dim 1 : vector<8x512xf32>, i32 -> vector<8x512xf32>
    %94 = vector.extract_strided_slice %0 {offsets = [16, 0], sizes = [1, 512], strides = [1, 1]} : vector<17x512xf32> to vector<1x512xf32>
    %95 = vector.broadcast %94 : vector<1x512xf32> to vector<8x512xf32>
    %96 = arith.mulf %95, %93 : vector<8x512xf32>
    %c64_44 = arith.constant 64 : index
    %c0_45 = arith.constant 0 : index
    %97 = vector.load %arg7[%c64_44, %c0_45] : memref<80x512xf32, #tpu.memory_space<vmem>>, vector<8x512xf32>
    tpu.vector_store %arg7[%c64_44, %c0_45], %96 {strides = array<i32>} : memref<80x512xf32, #tpu.memory_space<vmem>>, vector<8x512xf32>,
    %c72_46 = arith.constant 72 : index
    %c0_47 = arith.constant 0 : index
    %98 = vector.load %arg7[%c72_46, %c0_47] : memref<80x512xf32, #tpu.memory_space<vmem>>, vector<8x512xf32>
    tpu.vector_store %arg7[%c72_46, %c0_47], %1 {strides = array<i32>} : memref<80x512xf32, #tpu.memory_space<vmem>>, vector<8x512xf32>,
    %c0_48 = arith.constant 0 : index
    %c0_49 = arith.constant 0 : index
    %99 = vector.load %arg4[%c0_48, %c0_49] : memref<8x80xf32, #tpu.memory_space<vmem>>, vector<8x80xf32>
    %c0_50 = arith.constant 0 : index
    %c0_51 = arith.constant 0 : index
    %100 = vector.load %arg7[%c0_50, %c0_51] : memref<80x512xf32, #tpu.memory_space<vmem>>, vector<80x512xf32>
    %cst_52 = arith.constant dense<0.000000e+00> : vector<8x512xf32>
    %101 = tpu.matmul %99, %100, %cst_52 {dimension_numbers = #tpu.dot_dimension_numbers<[1], [0], [0], [1], [0, 0, 1, 1], [], []>} : vector<8x80xf32>, vector<80x512xf32>, vector<8x512xf32> -> vector<8x512xf32>
    %cst_53 = arith.constant 0.000000e+00 : f32
    %102 = vector.broadcast %cst_53 : f32 to vector<8x512xf32>
    %103 = arith.maximumf %101, %102 : vector<8x512xf32>
    %c0_54 = arith.constant 0 : index
    %c0_55 = arith.constant 0 : index
    %c0_56 = arith.constant 0 : index
    %104 = vector.load %arg5[%c0_54, %c0_55, %c0_56] : memref<1x8x512xf32, #tpu.memory_space<vmem>>, vector<1x8x512xf32>
    %105 = vector.shape_cast %104 : vector<1x8x512xf32> to vector<8x512xf32>
    %106 = vector.shape_cast %103 : vector<8x512xf32> to vector<1x8x512xf32>
    tpu.vector_store %arg5[%c0_54, %c0_55, %c0_56], %106 {strides = array<i32>} : memref<1x8x512xf32, #tpu.memory_space<vmem>>, vector<1x8x512xf32>,
    return
  }
  func.func @transform_0(%arg0: i32) -> (i32, i32, i32) {
    %c0_i32 = arith.constant 0 : i32
    %c0_i32_0 = arith.constant 0 : i32
    %c0_i32_1 = arith.constant 0 : i32
    return %arg0, %c0_i32, %c0_i32_0 : i32, i32, i32
  }
  func.func @transform_1(%arg0: i32) -> (i32, i32) {
    %c0_i32 = arith.constant 0 : i32
    %c0_i32_0 = arith.constant 0 : i32
    %c0_i32_1 = arith.constant 0 : i32
    return %c0_i32, %c0_i32_0 : i32, i32
  }
  func.func @transform_2(%arg0: i32) -> (i32, i32) {
    %c0_i32 = arith.constant 0 : i32
    %c0_i32_0 = arith.constant 0 : i32
    %c0_i32_1 = arith.constant 0 : i32
    return %c0_i32, %c0_i32_0 : i32, i32
  }
  func.func @transform_3(%arg0: i32) -> (i32, i32) {
    %c0_i32 = arith.constant 0 : i32
    %c0_i32_0 = arith.constant 0 : i32
    %c0_i32_1 = arith.constant 0 : i32
    return %c0_i32, %c0_i32_0 : i32, i32
  }
  func.func @transform_4(%arg0: i32) -> (i32, i32, i32) {
    %c0_i32 = arith.constant 0 : i32
    %c0_i32_0 = arith.constant 0 : i32
    %c0_i32_1 = arith.constant 0 : i32
    return %arg0, %c0_i32, %c0_i32_0 : i32, i32, i32
  }
}

</mosaic_0001>

<bundles_post_ra>
// kernel: dedouble_conv_forward.1
= control target key start
LH: loop header
LB: loop body
LE: loop exit
PB: predicated region body
PF: predicated region fallthrough
CT: control target
= control target key end

     0   :  { %s937_s19 = smov 111   ;;  %s938_s5 = smov 112   ;;  %v944_v8 = vmov 0.0   ;;  %v41_v9 = vlaneseq  ;;  %vm400_vm8 = vcmask 654336   ;;  %s1545_s0 = inlined_call_operand.vmem [shape: f32[1,8,512], index: 0, kind: input, shape index: {}]   ;;  %s1546_s1 = inlined_call_operand.vmem [shape: f32[17,512], index: 1, kind: input, shape index: {}]   ;;  %s1547_s2 = inlined_call_operand.vmem [shape: f32[8,80], index: 2, kind: input, shape index: {}]   ;;  %s1548_s3 = inlined_call_operand.vmem [shape: f32[8,80], index: 3, kind: input, shape index: {}]   ;;  %s1549_s4 = inlined_call_operand.vmem [shape: f32[1,8,512], index: 4, kind: output, shape index: {}]  }
   0x1   :  { %v974_v0 = vld [vmem:[%s1545_s0 + $0x10] sm:$0xff]  ;;  %v979_v1 = vld [vmem:[%s1545_s0] sm:$0xff]  ;;  %v988_v2 = vld [vmem:[%s1545_s0 + $0x18] sm:$0xff]  ;;  %s939_s6 = smov 113   ;;  %s940_s7 = smov 127   ;;  %468 = vmatprep.mubr.f32.mxu0 %v944_v8  ;;  %539 = vmatprep.mubr.f32.mxu1 %v944_v8 }
   0x2   :  { %322 = vrot.lane.b32.xlu1 %v974_v0, %s937_s19  ;;  %318 = vrot.lane.b32.xlu0 %v979_v1, %s937_s19  ;;  %v993_v3 = vld [vmem:[%s1545_s0 + $0x8] sm:$0xff]  ;;  %v1003_v5 = vld [vmem:[%s1546_s1 + $0x18] sm:$0xff]  ;;  %s941_s8 = smov 1   ;;  %s942_s9 = smov 15   ;;  %v1081_v10 = vand.u32 127, %v41_v9  ;;  %v1104_v17 = vshrl.u32 %v41_v9, 7 }
   0x3   :  { %v998_v4 = vld [vmem:[%s1546_s1 + $0x8] sm:$0xff]  ;;  %487 = vmatprep.subr.mxu1 %v1003_v5  ;;  %v1010_v6 = vld [vmem:[%s1546_s1] sm:$0xff]  ;;  %v1015_v7 = vld [vmem:[%s1546_s1 + $0x10] sm:$0xff]  ;;  %s943_s10 = smov 16   ;;  %s945_s11 = smov 17  }
   0x4   :  { %416 = vmatprep.subr.mxu0 %v998_v4  ;;  %488 = vmatpush1.msra.mxu1 %v1015_v7  ;;  %v1086_v13 = vld [vmem:[%s1546_s1 + $0x50] ss:$0 sm:$0xff]  ;;  %v1091_v14 = vld [vmem:[%s1546_s1 + $0x58] ss:$0 sm:$0xff]  ;;  %vm326_vm0 = vcmp.lt.s32.totalorder %v1081_v10, 111  ;;  %v296_v28 = vsub.s32 7, %v1104_v17 }
   0x5   :  { %417 = vmatpush1.msra.mxu0 %v1010_v6  ;;  %v1097_v15 = vld [vmem:[%s1546_s1 + $0x40] ss:$0 sm:$0xff]  ;;  %v1102_v16 = vld [vmem:[%s1546_s1 + $0x48] ss:$0 sm:$0xff]  ;;  %v1122_v29 = vld [vmem:[%s1546_s1 + $0x38] sm:$0xff]  ;;  %vm289_vm1 = vcmp.lt.s32.totalorder %v1081_v10, 112 }
   0x6   :  { %324 = vrot.lane.b32.xlu1 %v988_v2, %s937_s19  ;;  %320 = vrot.lane.b32.xlu0 %v993_v3, %s937_s19  ;;  %v1127_v30 = vld [vmem:[%s1546_s1 + $0x28] sm:$0xff]  ;;  %v1132_v31 = vld [vmem:[%s1546_s1 + $0x30] sm:$0xff]  ;;  %v1141_v35 = vrot.slane %v1122_v29, %v296_v28  ;;  %v259_v49 = vsub.s32 6, %v1104_v17  ;;  %vm252_vm2 = vcmp.lt.s32.totalorder %v1081_v10, 113  ;;  %v185_v62 = vsub.s32 4, %v1104_v17 }
   0x7   :  { %v1137_v33 = vld [vmem:[%s1546_s1 + $0x20] sm:$0xff]  ;;  %v1144_v36 = vrot.slane %v1127_v30, %v296_v28  ;;  %v1147_v37 = vrot.slane %v1132_v31, %v296_v28  ;;  %vm215_vm3 = vcmp.lt.s32.totalorder %v1081_v10, 127  ;;  %vm154_vm4 = vcmp.lt.s32.totalorder %v1081_v10, 1 }
   0x8   :  { %v1150_v38 = vrot.slane %v1137_v33, %v296_v28  ;;  %v1167_v52 = vrot.slane %v1122_v29, %v259_v49  ;;  %v1170_v53 = vrot.slane %v1127_v30, %v259_v49  ;;  %v1173_v54 = vrot.slane %v1132_v31, %v259_v49 }
   0x9   :  { %v1176_v55 = vrot.slane %v1137_v33, %v259_v49  ;;  %v1213_v28 = vrot.slane %v1137_v33, %v185_v62  ;;  %vm117_vm5 = vcmp.lt.s32.totalorder %v1081_v10, 15  ;;  %vm80_vm6 = vcmp.lt.s32.totalorder %v1081_v10, 16 }
   0xa   :  { %283 = vrot.lane.b32.xlu1 %v993_v3, %s938_s5  ;;  %281 = vrot.lane.b32.xlu0 %v979_v1, %s938_s5  ;;  %vm43_vm7 = vcmp.lt.s32.totalorder %v1081_v10, 17 }
   0xe   :  { %287 = vrot.lane.b32.xlu1 %v988_v2, %s938_s5  ;;  %285 = vrot.lane.b32.xlu0 %v974_v0, %s938_s5 }
  0x12   :  { %246 = vrot.lane.b32.xlu1 %v993_v3, %s939_s6  ;;  %244 = vrot.lane.b32.xlu0 %v979_v1, %s939_s6 }
  0x16   :  { %250 = vrot.lane.b32.xlu1 %v988_v2, %s939_s6  ;;  %248 = vrot.lane.b32.xlu0 %v974_v0, %s939_s6 }
  0x1a   :  { %209 = vrot.lane.b32.xlu1 %v993_v3, %s940_s7  ;;  %207 = vrot.lane.b32.xlu0 %v979_v1, %s940_s7 }
  0x1e   :  { %213 = vrot.lane.b32.xlu1 %v988_v2, %s940_s7  ;;  %211 = vrot.lane.b32.xlu0 %v974_v0, %s940_s7 }
  0x22   :  { %148 = vrot.lane.b32.xlu1 %v993_v3, %s941_s8  ;;  %146 = vrot.lane.b32.xlu0 %v979_v1, %s941_s8 }
  0x26   :  { %152 = vrot.lane.b32.xlu1 %v988_v2, %s941_s8  ;;  %150 = vrot.lane.b32.xlu0 %v974_v0, %s941_s8 }
  0x2a   :  { %111 = vrot.lane.b32.xlu1 %v993_v3, %s942_s9  ;;  %109 = vrot.lane.b32.xlu0 %v979_v1, %s942_s9 }
  0x2e   :  { %115 = vrot.lane.b32.xlu1 %v988_v2, %s942_s9  ;;  %113 = vrot.lane.b32.xlu0 %v974_v0, %s942_s9 }
  0x32   :  { %74 = vrot.lane.b32.xlu1 %v993_v3, %s943_s10  ;;  %72 = vrot.lane.b32.xlu0 %v979_v1, %s943_s10 }
  0x36   :  { %78 = vrot.lane.b32.xlu1 %v988_v2, %s943_s10  ;;  %76 = vrot.lane.b32.xlu0 %v974_v0, %s943_s10 }
  0x3a   :  { %35 = vrot.lane.b32.xlu1 %v993_v3, %s945_s11  ;;  %33 = vrot.lane.b32.xlu0 %v979_v1, %s945_s11 }
  0x3e   :  { %39 = vrot.lane.b32.xlu1 %v988_v2, %s945_s11  ;;  %37 = vrot.lane.b32.xlu0 %v974_v0, %s945_s11 }
  0x74   :  { %v323_v11 = vpop.permute.xlu1 %322  ;;  %v319_v12 = vpop.permute.xlu0 %318 }
  0x78   :  { %v325_v18 = vpop.permute.xlu1 %324  ;;  %v321_v19 = vpop.permute.xlu0 %320 }
  0x79   :  { %v327_v20 = vsel %vm326_vm0, %v323_v11, %v325_v18  ;;  %v330_v21 = vsel %vm326_vm0, %v325_v18, %v319_v12  ;;  %v328_v22 = vsel %vm326_vm0, %v321_v19, %v323_v11  ;;  %v329_v23 = vsel %vm326_vm0, %v319_v12, %v321_v19 }
  0x7a   :  { %v349_v24 = vmul.f32 %v1086_v13, %v327_v20  ;;  %v350_v25 = vmul.f32 %v1091_v14, %v330_v21  ;;  %v347_v26 = vmul.f32 %v1097_v15, %v329_v23  ;;  %v348_v27 = vmul.f32 %v1102_v16, %v328_v22 }
  0x7b   :  { %v222_v18 = vsub.s32 5, %v1104_v17  ;;  %v161_v21 = vsub.s32 3, %v1104_v17  ;;  %v1195_v22 = vrot.slane %v1127_v30, %v185_v62 }
  0x7c   :  { %v284_v32 = vpop.permute.xlu1 %283  ;;  %418 = vmatprep.subr.mxu0 %v348_v27  ;;  %489 = vmatprep.subr.mxu1 %v350_v25  ;;  %v282_v34 = vpop.permute.xlu0 %281 }
  0x7d   :  { %419 = vmatpush1.msra.mxu0 %v347_v26  ;;  %490 = vmatpush1.msra.mxu1 %v349_v24  ;;  %v292_v39 = vsel %vm289_vm1, %v282_v34, %v284_v32  ;;  %v1198_v23 = vrot.slane %v1122_v29, %v222_v18  ;;  %v1201_v24 = vrot.slane %v1127_v30, %v222_v18 }
  0x7e   :  { %v310_v48 = vmul.f32 %v1150_v38, %v292_v39  ;;  %v1204_v25 = vrot.slane %v1132_v31, %v222_v18  ;;  %v1207_v26 = vrot.slane %v1122_v29, %v185_v62  ;;  %v1210_v27 = vrot.slane %v1137_v33, %v222_v18 }
  0x80   :  { %v288_v40 = vpop.permute.xlu1 %287  ;;  %v286_v41 = vpop.permute.xlu0 %285  ;;  %v202_v49 = vmul.f32 %v1207_v26, %v988_v2 }
  0x81   :  { %v293_v42 = vsel %vm289_vm1, %v288_v40, %v282_v34  ;;  %v290_v43 = vsel %vm289_vm1, %v286_v41, %v288_v40  ;;  %v291_v44 = vsel %vm289_vm1, %v284_v32, %v286_v41  ;;  %v1216_v32 = vrot.slane %v1132_v31, %v185_v62 }
  0x82   :  { %v313_v45 = vmul.f32 %v1141_v35, %v293_v42  ;;  %v311_v46 = vmul.f32 %v1144_v36, %v291_v44  ;;  %v312_v47 = vmul.f32 %v1147_v37, %v290_v43  ;;  %v1222_v41 = vrot.slane %v1127_v30, %v161_v21 }
  0x84   :  { %v247_v50 = vpop.permute.xlu1 %246  ;;  %420 = vmatprep.subr.mxu0 %v311_v46  ;;  %491 = vmatprep.subr.mxu1 %v313_v45  ;;  %v245_v51 = vpop.permute.xlu0 %244  ;;  %v200_v45 = vmul.f32 %v1195_v22, %v993_v3 }
  0x85   :  { %421 = vmatpush1.msra.mxu0 %v310_v48  ;;  %492 = vmatpush1.msra.mxu1 %v312_v47  ;;  %v255_v56 = vsel %vm252_vm2, %v245_v51, %v247_v50 }
  0x86   :  { %v273_v12 = vmul.f32 %v1176_v55, %v255_v56  ;;  %v201_v56 = vmul.f32 %v1216_v32, %v974_v0  ;;  %v1252_v0 = vrot.slane %v1122_v29, %v161_v21 }
  0x88   :  { %v251_v57 = vpop.permute.xlu1 %250  ;;  %v249_v58 = vpop.permute.xlu0 %248 }
  0x89   :  { %v256_v59 = vsel %vm252_vm2, %v251_v57, %v245_v51  ;;  %v253_v60 = vsel %vm252_vm2, %v249_v58, %v251_v57  ;;  %v254_v61 = vsel %vm252_vm2, %v247_v50, %v249_v58  ;;  %v199_v51 = vmul.f32 %v1213_v28, %v979_v1 }
  0x8a   :  { %v276_v63 = vmul.f32 %v1167_v52, %v256_v59  ;;  %v274_v9 = vmul.f32 %v1170_v53, %v254_v61  ;;  %v275_v11 = vmul.f32 %v1173_v54, %v253_v60  ;;  %v1245_v59 = vrot.slane %v1137_v33, %v161_v21 }
  0x8b   :  { %v1249_v1 = vrot.slane %v1132_v31, %v161_v21  ;;  %v124_v60 = vsub.s32 2, %v1104_v17 }
  0x8c   :  { %v210_v19 = vpop.permute.xlu1 %209  ;;  %422 = vmatprep.subr.mxu0 %v274_v9  ;;  %493 = vmatprep.subr.mxu1 %v276_v63  ;;  %v208_v20 = vpop.permute.xlu0 %207 }
  0x8d   :  { %423 = vmatpush1.msra.mxu0 %v273_v12  ;;  %494 = vmatpush1.msra.mxu1 %v275_v11  ;;  %v218_v34 = vsel %vm215_vm3, %v208_v20, %v210_v19 }
  0x8e   :  { %v236_v50 = vmul.f32 %v1210_v27, %v218_v34 }
  0x90   :  { %v214_v39 = vpop.permute.xlu1 %213  ;;  %v212_v40 = vpop.permute.xlu0 %211 }
  0x91   :  { %v219_v42 = vsel %vm215_vm3, %v214_v39, %v208_v20  ;;  %v216_v43 = vsel %vm215_vm3, %v212_v40, %v214_v39  ;;  %v217_v44 = vsel %vm215_vm3, %v210_v19, %v212_v40  ;;  %v1266_v20 = vrot.slane %v1127_v30, %v124_v60 }
  0x92   :  { %v239_v46 = vmul.f32 %v1198_v23, %v219_v42  ;;  %v237_v47 = vmul.f32 %v1201_v24, %v217_v44  ;;  %v238_v48 = vmul.f32 %v1204_v25, %v216_v43  ;;  %v1271_v40 = vrot.slane %v1137_v33, %v124_v60 }
  0x93   :  { %v1275_v43 = vrot.slane %v1132_v31, %v124_v60  ;;  %v1278_v44 = vrot.slane %v1122_v29, %v124_v60 }
  0x94   :  { %v149_v57 = vpop.permute.xlu1 %148  ;;  %424 = vmatprep.subr.mxu0 %v237_v47  ;;  %495 = vmatprep.subr.mxu1 %v239_v46  ;;  %v147_v3 = vpop.permute.xlu0 %146 }
  0x95   :  { %v157_v58 = vsel %vm154_vm4, %v147_v3, %v149_v57  ;;  %425 = vmatpush1.msra.mxu0 %v236_v50  ;;  %496 = vmatpush1.msra.mxu1 %v238_v48 }
  0x96   :  { %v176_v2 = vmul.f32 %v1222_v41, %v157_v58  ;;  %426 = vmatprep.subr.mxu0 %v200_v45  ;;  %497 = vmatprep.subr.mxu1 %v202_v49  ;;  %v87_v45 = vsub.s32 1, %v1104_v17 }
  0x97   :  { %427 = vmatpush1.msra.mxu0 %v199_v51  ;;  %498 = vmatpush1.msra.mxu1 %v201_v56 }
  0x98   :  { %v153_v61 = vpop.permute.xlu1 %152  ;;  %v151_v62 = vpop.permute.xlu0 %150  ;;  %428 = vmatprep.subr.mxu0 %v176_v2 }
  0x99   :  { %v158_v63 = vsel %vm154_vm4, %v153_v61, %v147_v3  ;;  %v155_v9 = vsel %vm154_vm4, %v151_v62, %v153_v61  ;;  %v156_v11 = vsel %vm154_vm4, %v149_v57, %v151_v62  ;;  %v1292_v3 = vrot.slane %v1127_v30, %v87_v45 }
  0x9a   :  { %v175_v12 = vmul.f32 %v1245_v59, %v158_v63  ;;  %v177_v18 = vmul.f32 %v1249_v1, %v156_v11  ;;  %v178_v19 = vmul.f32 %v1252_v0, %v155_v9  ;;  %v1297_v61 = vrot.slane %v1137_v33, %v87_v45 }
  0x9b   :  { %v1301_v63 = vrot.slane %v1132_v31, %v87_v45  ;;  %v1304_v9 = vrot.slane %v1122_v29, %v87_v45  ;;  %v50_v11 = vsub.s32 0, %v1104_v17 }
  0x9c   :  { %v112_v21 = vpop.permute.xlu1 %111  ;;  %499 = vmatprep.subr.mxu1 %v178_v19  ;;  %v110_v34 = vpop.permute.xlu0 %109  ;;  %429 = vmatpush1.msra.mxu0 %v175_v12 }
  0x9d   :  { %v120_v39 = vsel %vm117_vm5, %v110_v34, %v112_v21  ;;  %500 = vmatpush1.msra.mxu1 %v177_v18  ;;  %v1318_v45 = vrot.slane %v1127_v30, %v50_v11 }
  0x9e   :  { %v139_v42 = vmul.f32 %v1266_v20, %v120_v39 }
  0xa0   :  { %v116_v46 = vpop.permute.xlu1 %115  ;;  %v114_v47 = vpop.permute.xlu0 %113  ;;  %430 = vmatprep.subr.mxu0 %v139_v42 }
  0xa1   :  { %v121_v48 = vsel %vm117_vm5, %v116_v46, %v110_v34  ;;  %v118_v49 = vsel %vm117_vm5, %v114_v47, %v116_v46  ;;  %v119_v50 = vsel %vm117_vm5, %v112_v21, %v114_v47 }
  0xa2   :  { %v138_v51 = vmul.f32 %v1271_v40, %v121_v48  ;;  %v140_v56 = vmul.f32 %v1275_v43, %v119_v50  ;;  %v141_v57 = vmul.f32 %v1278_v44, %v118_v49  ;;  %v1324_v50 = vrot.slane %v1137_v33, %v50_v11 }
  0xa4   :  { %v75_v58 = vpop.permute.xlu1 %74  ;;  %501 = vmatprep.subr.mxu1 %v141_v57  ;;  %v73_v2 = vpop.permute.xlu0 %72  ;;  %431 = vmatpush1.msra.mxu0 %v138_v51  ;;  %v1327_v51 = vrot.slane %v1132_v31, %v50_v11 }
  0xa5   :  { %v83_v60 = vsel %vm80_vm6, %v73_v2, %v75_v58  ;;  %502 = vmatpush1.msra.mxu1 %v140_v56  ;;  %v1330_v56 = vrot.slane %v1122_v29, %v50_v11  ;;  %v359_v29 = vld [vmem:[%s1547_s2] sm:$0xff] }
  0xa6   :  { %v102_v62 = vmul.f32 %v1292_v3, %v83_v60 }
  0xa8   :  { %v79_v12 = vpop.permute.xlu1 %78  ;;  %v77_v18 = vpop.permute.xlu0 %76  ;;  %432 = vmatprep.subr.mxu0 %v102_v62 }
  0xa9   :  { %v84_v19 = vsel %vm80_vm6, %v79_v12, %v73_v2  ;;  %v81_v21 = vsel %vm80_vm6, %v77_v18, %v79_v12  ;;  %v82_v34 = vsel %vm80_vm6, %v75_v58, %v77_v18 }
  0xaa   :  { %v101_v39 = vmul.f32 %v1297_v61, %v84_v19  ;;  %v103_v42 = vmul.f32 %v1301_v63, %v82_v34  ;;  %v104_v17 = vmul.f32 %v1304_v9, %v81_v21 }
  0xac   :  { %v36_v46 = vpop.permute.xlu1 %35  ;;  %503 = vmatprep.subr.mxu1 %v104_v17  ;;  %v34_v47 = vpop.permute.xlu0 %33  ;;  %433 = vmatpush1.msra.mxu0 %v101_v39 }
  0xad   :  { %v46_v48 = vsel %vm43_vm7, %v34_v47, %v36_v46  ;;  %504 = vmatpush1.msra.mxu1 %v103_v42 }
  0xae   :  { %v65_v49 = vmul.f32 %v1318_v45, %v46_v48 }
  0xb0   :  { %v40_v30 = vpop.permute.xlu1 %39  ;;  %v38_v57 = vpop.permute.xlu0 %37  ;;  %434 = vmatprep.subr.mxu0 %v65_v49 }
  0xb1   :  { %v47_v58 = vsel %vm43_vm7, %v40_v30, %v34_v47  ;;  %v44_v2 = vsel %vm43_vm7, %v38_v57, %v40_v30  ;;  %v45_v60 = vsel %vm43_vm7, %v36_v46, %v38_v57 }
  0xb2   :  { %v64_v33 = vmul.f32 %v1324_v50, %v47_v58  ;;  %v66_v31 = vmul.f32 %v1327_v51, %v45_v60  ;;  %v67_v62 = vmul.f32 %v1330_v56, %v44_v2 }
  0xb4   :  { %435 = vmatpush1.msra.mxu0 %v64_v33  ;;  %505 = vmatprep.subr.mxu1 %v67_v62 }
  0xb5   :  { %924 = vmatmul.mubr.msk.f32.vlgmr.msra.gmra.mxu0 %vm400_vm8, %v359_v29  ;;  %506 = vmatpush1.msra.mxu1 %v66_v31 }
  0xb6   :  { %925 = vmatmul.mubr.msk.f32.vlgmr.msra.gmra.mxu1 %vm400_vm8, %v359_v29  ;;  %778 = vmatprep.subr.mxu0 %v998_v4 }
  0xb7   :  { %779 = vmatpush1.msra.mxu0 %v1010_v6  ;;  %849 = vmatprep.subr.mxu1 %v1003_v5 }
  0xb8   :  { %850 = vmatpush1.msra.mxu1 %v1015_v7  ;;  %830 = vmatprep.mubr.f32.mxu0 %v944_v8 }
  0xb9   :  { %901 = vmatprep.mubr.f32.mxu1 %v944_v8 }
 0x175   :  { %v470_v11 = vpop.f32.mrf.mxu0 }
 0x176   :  { %v1352_v12 = vmax.f32 %v470_v11, 0.0  ;;  %v541_v18 = vpop.f32.mrf.mxu1 }
 0x177   :  { %v472_v19 = vpop.f32.mrf.mxu0  ;;  %v1356_v34 = vmax.f32 %v541_v18, 0.0 }
 0x178   :  { %v1354_v21 = vmax.f32 %v472_v19, 0.0  ;;  %698 = vrot.lane.b32.xlu0 %v1352_v12, %s937_s19  ;;  %v543_v4 = vpop.f32.mrf.mxu1 }
 0x179   :  { %v1362_v5 = vmax.f32 %v543_v4, 0.0 }
 0x17a   :  { %700 = vrot.lane.b32.xlu1 %v1354_v21, %s937_s19 }
 0x17c   :  { %702 = vrot.lane.b32.xlu0 %v1356_v34, %s937_s19 }
 0x17e   :  { %704 = vrot.lane.b32.xlu1 %v1362_v5, %s937_s19 }
 0x180   :  { %678 = vrot.lane.b32.xlu0 %v1352_v12, %s938_s5 }
 0x182   :  { %680 = vrot.lane.b32.xlu1 %v1354_v21, %s938_s5 }
 0x184   :  { %682 = vrot.lane.b32.xlu0 %v1356_v34, %s938_s5 }
 0x186   :  { %684 = vrot.lane.b32.xlu1 %v1362_v5, %s938_s5 }
 0x188   :  { %658 = vrot.lane.b32.xlu0 %v1352_v12, %s939_s6 }
 0x18a   :  { %660 = vrot.lane.b32.xlu1 %v1354_v21, %s939_s6 }
 0x18c   :  { %662 = vrot.lane.b32.xlu0 %v1356_v34, %s939_s6 }
 0x18e   :  { %664 = vrot.lane.b32.xlu1 %v1362_v5, %s939_s6 }
 0x190   :  { %638 = vrot.lane.b32.xlu0 %v1352_v12, %s940_s7 }
 0x192   :  { %640 = vrot.lane.b32.xlu1 %v1354_v21, %s940_s7 }
 0x194   :  { %642 = vrot.lane.b32.xlu0 %v1356_v34, %s940_s7 }
 0x196   :  { %644 = vrot.lane.b32.xlu1 %v1362_v5, %s940_s7 }
 0x198   :  { %610 = vrot.lane.b32.xlu0 %v1352_v12, %s941_s8 }
 0x19a   :  { %612 = vrot.lane.b32.xlu1 %v1354_v21, %s941_s8 }
 0x19c   :  { %614 = vrot.lane.b32.xlu0 %v1356_v34, %s941_s8 }
 0x19e   :  { %616 = vrot.lane.b32.xlu1 %v1362_v5, %s941_s8 }
 0x1a0   :  { %590 = vrot.lane.b32.xlu0 %v1352_v12, %s942_s9 }
 0x1a2   :  { %592 = vrot.lane.b32.xlu1 %v1354_v21, %s942_s9 }
 0x1a4   :  { %594 = vrot.lane.b32.xlu0 %v1356_v34, %s942_s9 }
 0x1a6   :  { %596 = vrot.lane.b32.xlu1 %v1362_v5, %s942_s9 }
 0x1a8   :  { %570 = vrot.lane.b32.xlu0 %v1352_v12, %s943_s10 }
 0x1aa   :  { %572 = vrot.lane.b32.xlu1 %v1354_v21, %s943_s10 }
 0x1ac   :  { %574 = vrot.lane.b32.xlu0 %v1356_v34, %s943_s10 }
 0x1ae   :  { %576 = vrot.lane.b32.xlu1 %v1362_v5, %s943_s10 }
 0x1b0   :  { %550 = vrot.lane.b32.xlu0 %v1352_v12, %s945_s11 }
 0x1b2   :  { %552 = vrot.lane.b32.xlu1 %v1354_v21, %s945_s11 }
 0x1b4   :  { %554 = vrot.lane.b32.xlu0 %v1356_v34, %s945_s11 }
 0x1b6   :  { %556 = vrot.lane.b32.xlu1 %v1362_v5, %s945_s11 }
 0x1ea   :  { %v699_v6 = vpop.permute.xlu0 %698 }
 0x1ec   :  { %v701_v7 = vpop.permute.xlu1 %700 }
 0x1ed   :  { %v708_v8 = vsel %vm326_vm0, %v699_v6, %v701_v7 }
 0x1ee   :  { %v703_v39 = vpop.permute.xlu0 %702  ;;  %v710_v47 = vmul.f32 %v1097_v15, %v708_v8 }
 0x1ef   :  { %v707_v42 = vsel %vm326_vm0, %v701_v7, %v703_v39 }
 0x1f0   :  { %v711_v17 = vmul.f32 %v1102_v16, %v707_v42  ;;  %v705_v46 = vpop.permute.xlu1 %704 }
 0x1f1   :  { %v706_v48 = vsel %vm326_vm0, %v703_v39, %v705_v46  ;;  %v709_v49 = vsel %vm326_vm0, %v705_v46, %v699_v6 }
 0x1f2   :  { %v712_v30 = vmul.f32 %v1086_v13, %v706_v48  ;;  %v713_v57 = vmul.f32 %v1091_v14, %v709_v49  ;;  %v679_v58 = vpop.permute.xlu0 %678  ;;  %780 = vmatprep.subr.mxu0 %v711_v17 }
 0x1f3   :  { %781 = vmatpush1.msra.mxu0 %v710_v47 }
 0x1f4   :  { %851 = vmatprep.subr.mxu1 %v713_v57  ;;  %v681_v2 = vpop.permute.xlu1 %680 }
 0x1f5   :  { %852 = vmatpush1.msra.mxu1 %v712_v30  ;;  %v688_v16 = vsel %vm289_vm1, %v679_v58, %v681_v2 }
 0x1f6   :  { %v683_v15 = vpop.permute.xlu0 %682  ;;  %v690_v13 = vmul.f32 %v688_v16, %v1150_v38  ;;  %v631_v16 = vmul.f32 %v1354_v21, %v1195_v22 }
 0x1f7   :  { %v687_v60 = vsel %vm289_vm1, %v681_v2, %v683_v15 }
 0x1f8   :  { %v691_v33 = vmul.f32 %v687_v60, %v1144_v36  ;;  %v685_v31 = vpop.permute.xlu1 %684 }
 0x1f9   :  { %v686_v14 = vsel %vm289_vm1, %v683_v15, %v685_v31  ;;  %v689_v62 = vsel %vm289_vm1, %v685_v31, %v679_v58  ;;  %v633_v15 = vmul.f32 %v1362_v5, %v1207_v26 }
 0x1fa   :  { %v692_v29 = vmul.f32 %v686_v14, %v1147_v37  ;;  %v693_v11 = vmul.f32 %v689_v62, %v1141_v35  ;;  %v659_v18 = vpop.permute.xlu0 %658  ;;  %782 = vmatprep.subr.mxu0 %v691_v33 }
 0x1fb   :  { %783 = vmatpush1.msra.mxu0 %v690_v13 }
 0x1fc   :  { %853 = vmatprep.subr.mxu1 %v693_v11  ;;  %v661_v19 = vpop.permute.xlu1 %660 }
 0x1fd   :  { %854 = vmatpush1.msra.mxu1 %v692_v29  ;;  %v668_v36 = vsel %vm252_vm2, %v659_v18, %v661_v19 }
 0x1fe   :  { %v663_v38 = vpop.permute.xlu0 %662  ;;  %v670_v37 = vmul.f32 %v668_v36, %v1176_v55 }
 0x1ff   :  { %v667_v4 = vsel %vm252_vm2, %v661_v19, %v663_v38 }
 0x200   :  { %v671_v6 = vmul.f32 %v667_v4, %v1170_v53  ;;  %v665_v7 = vpop.permute.xlu1 %664 }
 0x201   :  { %v666_v35 = vsel %vm252_vm2, %v663_v38, %v665_v7  ;;  %v669_v8 = vsel %vm252_vm2, %v665_v7, %v659_v18 }
 0x202   :  { %v672_v39 = vmul.f32 %v666_v35, %v1173_v54  ;;  %v673_v42 = vmul.f32 %v669_v8, %v1167_v52  ;;  %v639_v17 = vpop.permute.xlu0 %638  ;;  %784 = vmatprep.subr.mxu0 %v671_v6 }
 0x203   :  { %785 = vmatpush1.msra.mxu0 %v670_v37 }
 0x204   :  { %855 = vmatprep.subr.mxu1 %v673_v42  ;;  %v641_v46 = vpop.permute.xlu1 %640 }
 0x205   :  { %856 = vmatpush1.msra.mxu1 %v672_v39  ;;  %v648_v53 = vsel %vm215_vm3, %v639_v17, %v641_v46 }
 0x206   :  { %v643_v55 = vpop.permute.xlu0 %642  ;;  %v650_v54 = vmul.f32 %v648_v53, %v1210_v27 }
 0x207   :  { %v647_v47 = vsel %vm215_vm3, %v641_v46, %v643_v55 }
 0x208   :  { %v651_v48 = vmul.f32 %v647_v47, %v1201_v24  ;;  %v645_v49 = vpop.permute.xlu1 %644  ;;  %v630_v24 = vmul.f32 %v1352_v12, %v1213_v28 }
 0x209   :  { %v646_v52 = vsel %vm215_vm3, %v643_v55, %v645_v49  ;;  %v649_v30 = vsel %vm215_vm3, %v645_v49, %v639_v17 }
 0x20a   :  { %v652_v57 = vmul.f32 %v646_v52, %v1204_v25  ;;  %v653_v58 = vmul.f32 %v649_v30, %v1198_v23  ;;  %v611_v2 = vpop.permute.xlu0 %610  ;;  %786 = vmatprep.subr.mxu0 %v651_v48  ;;  %v632_v23 = vmul.f32 %v1356_v34, %v1216_v32 }
 0x20b   :  { %787 = vmatpush1.msra.mxu0 %v650_v54 }
 0x20c   :  { %857 = vmatprep.subr.mxu1 %v653_v58  ;;  %v613_v27 = vpop.permute.xlu1 %612  ;;  %788 = vmatprep.subr.mxu0 %v631_v16 }
 0x20d   :  { %v620_v25 = vsel %vm154_vm4, %v611_v2, %v613_v27  ;;  %789 = vmatpush1.msra.mxu0 %v630_v24  ;;  %858 = vmatpush1.msra.mxu1 %v652_v57 }
 0x20e   :  { %v623_v22 = vmul.f32 %v620_v25, %v1222_v41  ;;  %v615_v21 = vpop.permute.xlu0 %614  ;;  %859 = vmatprep.subr.mxu1 %v633_v15 }
 0x20f   :  { %860 = vmatpush1.msra.mxu1 %v632_v23  ;;  %v619_v28 = vsel %vm154_vm4, %v613_v27, %v615_v21 }
 0x210   :  { %v617_v12 = vpop.permute.xlu1 %616  ;;  %790 = vmatprep.subr.mxu0 %v623_v22  ;;  %v624_v41 = vmul.f32 %v619_v28, %v1249_v1 }
 0x211   :  { %v618_v26 = vsel %vm154_vm4, %v615_v21, %v617_v12  ;;  %v621_v5 = vsel %vm154_vm4, %v617_v12, %v611_v2 }
 0x212   :  { %v622_v60 = vmul.f32 %v621_v5, %v1245_v59  ;;  %v625_v32 = vmul.f32 %v618_v26, %v1252_v0  ;;  %v591_v34 = vpop.permute.xlu0 %590 }
 0x214   :  { %861 = vmatprep.subr.mxu1 %v625_v32  ;;  %v593_v33 = vpop.permute.xlu1 %592  ;;  %791 = vmatpush1.msra.mxu0 %v622_v60 }
 0x215   :  { %v600_v31 = vsel %vm117_vm5, %v591_v34, %v593_v33  ;;  %862 = vmatpush1.msra.mxu1 %v624_v41 }
 0x216   :  { %v603_v13 = vmul.f32 %v600_v31, %v1266_v20  ;;  %v595_v14 = vpop.permute.xlu0 %594 }
 0x217   :  { %v599_v62 = vsel %vm117_vm5, %v593_v33, %v595_v14 }
 0x218   :  { %v597_v29 = vpop.permute.xlu1 %596  ;;  %792 = vmatprep.subr.mxu0 %v603_v13  ;;  %v604_v19 = vmul.f32 %v599_v62, %v1275_v43 }
 0x219   :  { %v598_v59 = vsel %vm117_vm5, %v595_v14, %v597_v29  ;;  %v601_v1 = vsel %vm117_vm5, %v597_v29, %v591_v34 }
 0x21a   :  { %v602_v0 = vmul.f32 %v601_v1, %v1271_v40  ;;  %v605_v11 = vmul.f32 %v598_v59, %v1278_v44  ;;  %v571_v18 = vpop.permute.xlu0 %570 }
 0x21c   :  { %863 = vmatprep.subr.mxu1 %v605_v11  ;;  %v573_v20 = vpop.permute.xlu1 %572  ;;  %793 = vmatpush1.msra.mxu0 %v602_v0 }
 0x21d   :  { %v580_v36 = vsel %vm80_vm6, %v571_v18, %v573_v20  ;;  %864 = vmatpush1.msra.mxu1 %v604_v19 }
 0x21e   :  { %v583_v38 = vmul.f32 %v580_v36, %v1292_v3  ;;  %v575_v4 = vpop.permute.xlu0 %574 }
 0x21f   :  { %v579_v6 = vsel %vm80_vm6, %v573_v20, %v575_v4 }
 0x220   :  { %v577_v7 = vpop.permute.xlu1 %576  ;;  %794 = vmatprep.subr.mxu0 %v583_v38  ;;  %v584_v8 = vmul.f32 %v579_v6, %v1301_v63 }
 0x221   :  { %v578_v40 = vsel %vm80_vm6, %v575_v4, %v577_v7  ;;  %v581_v43 = vsel %vm80_vm6, %v577_v7, %v571_v18 }
 0x222   :  { %v582_v44 = vmul.f32 %v581_v43, %v1297_v61  ;;  %v585_v37 = vmul.f32 %v578_v40, %v1304_v9  ;;  %v551_v35 = vpop.permute.xlu0 %550 }
 0x224   :  { %865 = vmatprep.subr.mxu1 %v585_v37  ;;  %v553_v3 = vpop.permute.xlu1 %552  ;;  %795 = vmatpush1.msra.mxu0 %v582_v44 }
 0x225   :  { %v560_v39 = vsel %vm43_vm7, %v551_v35, %v553_v3  ;;  %866 = vmatpush1.msra.mxu1 %v584_v8 }
 0x226   :  { %v563_v42 = vmul.f32 %v560_v39, %v1318_v45  ;;  %v555_v17 = vpop.permute.xlu0 %554  ;;  %v722_v45 = vld [vmem:[%s1548_s3] sm:$0xff] }
 0x227   :  { %v559_v46 = vsel %vm43_vm7, %v553_v3, %v555_v17 }
 0x228   :  { %v557_v53 = vpop.permute.xlu1 %556  ;;  %796 = vmatprep.subr.mxu0 %v563_v42  ;;  %v564_v47 = vmul.f32 %v559_v46, %v1327_v51 }
 0x229   :  { %v558_v61 = vsel %vm43_vm7, %v555_v17, %v557_v53  ;;  %v561_v63 = vsel %vm43_vm7, %v557_v53, %v551_v35 }
 0x22a   :  { %v562_v9 = vmul.f32 %v561_v63, %v1324_v50  ;;  %v565_v55 = vmul.f32 %v558_v61, %v1330_v56 }
 0x22c   :  { %797 = vmatpush1.msra.mxu0 %v562_v9  ;;  %867 = vmatprep.subr.mxu1 %v565_v55 }
 0x22d   :  { %926 = vmatmul.mubr.msk.f32.vlgmr.msra.gmra.mxu0 %vm400_vm8, %v722_v45  ;;  %868 = vmatpush1.msra.mxu1 %v564_v47 }
 0x22e   :  { %927 = vmatmul.mubr.msk.f32.vlgmr.msra.gmra.mxu1 %vm400_vm8, %v722_v45 }
 0x2ed   :  { %v832_v48 = vpop.f32.mrf.mxu0 }
 0x2ee   :  { %v908_v10 = vmax.f32 %v832_v48, 0.0  ;;  %v903_v49 = vpop.f32.mrf.mxu1 }
 0x2ef   :  { %v910_v54 = vmax.f32 %v903_v49, 0.0  ;;  %v834_v50 = vpop.f32.mrf.mxu0 }
 0x2f0   :  { %912 = vst [vmem:[%s1549_s4] sm:$0xff] %v908_v10  ;;  %v909_v56 = vmax.f32 %v834_v50, 0.0  ;;  %v905_v52 = vpop.f32.mrf.mxu1 }
 0x2f1   :  { %914 = vst [vmem:[%s1549_s4 + $0x10] sm:$0xff] %v910_v54  ;;  %v911_v51 = vmax.f32 %v905_v52, 0.0 }
 0x2f2   :  { %913 = vst [vmem:[%s1549_s4 + $0x8] sm:$0xff] %v909_v56 }
 0x2f3   :  { %915 = vst [vmem:[%s1549_s4 + $0x18] sm:$0xff] %v911_v51 }

</bundles_post_ra>
